<compile_context>
chip_gen: v6e
topology: v6e:2x2x1
jax: 0.10.0
libtpu: 0.0.40
codegen_flags: <defaults>
</compile_context>

<pallas_src>
import jax
import jax.numpy as jnp
from jax.experimental import pallas as pl
from jax.experimental.pallas import tpu as pltpu


def _gelu_tanh(h):
    return 0.5 * h * (1.0 + jnp.tanh(0.7978845608028654 * (h + 0.044715 * h * h * h)))


def _distance_head_kernel(x_ref, w_ref, m_ref, wsel_ref, vecs_ref, o_ref):
    # x_ref   : (1, TS, S, H)   row-tile of the pair representation
    # w_ref   : (H, AA*H)       folded dense weights, column block aa = diag(p_aa) @ Wd
    # m_ref   : (AA*H, AA*H)    block-diagonal averaging matrix (1/H per H-block)
    # wsel_ref: (AA*H, AA)      out_proj weights replicated per head block
    # vecs_ref: (4, AA*H)       rows: dense_b | ln_gamma | ln_beta | out_b (broadcast)
    # o_ref   : (1, AA, TS*S)   lane-dense output tile
    _, ts, s, h = x_ref.shape
    tss = ts * s

    x2 = x_ref[0].reshape(tss, h)                                     # (TSS, H)

    # folded dense for all AA heads at once (full-lane MXU matmul)
    hpre = jnp.dot(x2, w_ref[...], preferred_element_type=jnp.float32)  # (TSS, AA*H)
    hpre = hpre + vecs_ref[0:1, :]                                       # + dense bias
    hact = _gelu_tanh(hpre)

    # LayerNorm over each H-sized lane segment (eps = 1e-5), via segment-mean matmuls
    mu = jnp.dot(hact, m_ref[...], preferred_element_type=jnp.float32)
    d = hact - mu
    var = jnp.dot(d * d, m_ref[...], preferred_element_type=jnp.float32)
    hn = d * jax.lax.rsqrt(var + 1e-5)
    hn = hn * vecs_ref[1:2, :] + vecs_ref[2:3, :]

    # out_proj per head -> (TSS, AA), then transpose the skinny matrix so the store
    # is lane-dense along TSS.
    cols = jnp.dot(hn, wsel_ref[...], preferred_element_type=jnp.float32)  # (TSS, AA)
    out = cols.T + vecs_ref[3:4, 0:1]                                      # (AA, TSS)
    o_ref[0] = out.astype(o_ref.dtype)


def _build_folded_params(params, A, H):
    AA = A * A
    AAH = AA * H
    p_flat = params["parameter"].reshape(AA, H).astype(jnp.float32)      # (AA, H)
    wd = params["dense_w"].astype(jnp.float32)                           # (H_in, H_out)

    # w_all[i, aa*H + o] = p_flat[aa, i] * wd[i, o]
    w_all = (p_flat[:, :, None] * wd[None, :, :])                        # (AA, Hin, Hout)
    w_all = jnp.transpose(w_all, (1, 0, 2)).reshape(H, AAH)

    # block-diagonal segment-averaging matrix
    m_seg = jnp.kron(jnp.eye(AA, dtype=jnp.float32),
                     jnp.full((H, H), 1.0 / H, jnp.float32))             # (AAH, AAH)

    # out_proj selection: wsel[aa*H + j, aa] = out_w[j]
    wsel = jnp.kron(jnp.eye(AA, dtype=jnp.float32),
                    params["out_w"].astype(jnp.float32).reshape(H, 1))   # (AAH, AA)

    out_b = params["out_b"].astype(jnp.float32)[0]
    vecs = jnp.stack([
        jnp.tile(params["dense_b"].astype(jnp.float32), AA),
        jnp.tile(params["ln_gamma"].astype(jnp.float32), AA),
        jnp.tile(params["ln_beta"].astype(jnp.float32), AA),
        jnp.full((AAH,), out_b, jnp.float32),
    ], axis=0)                                                           # (4, AAH)
    return w_all, m_seg, wsel, vecs


def _pick_row_tile(S, H, itemsize, budget_bytes=2 << 20):
    # Largest divisor TS of S whose (TS, S, H) x-block fits the budget, keeping the
    # flattened output block (TS*S) lane-aligned (or covering the whole S*S axis).
    for ts in range(S, 0, -1):
        if S % ts:
            continue
        if ts != S and (ts * S) % 128 != 0:
            continue
        if ts * S * H * itemsize <= budget_bytes or ts == 1:
            return ts
    return S


def distance_head_forward(x, params, atom_level):
    B, S, S2, H = x.shape
    assert S == S2
    A = atom_level
    AA = A * A
    AAH = AA * H
    L = S * A

    w_all, m_seg, wsel, vecs = _build_folded_params(params, A, H)
    TS = _pick_row_tile(S, H, x.dtype.itemsize)
    n_t = S // TS

    pre = pl.pallas_call(
        _distance_head_kernel,
        out_shape=jax.ShapeDtypeStruct((B, AA, S * S), jnp.float32),
        grid=(B, n_t),
        in_specs=[
            pl.BlockSpec((1, TS, S, H), lambda b, t: (b, t, 0, 0)),   # x (native dtype)
            pl.BlockSpec((H, AAH), lambda b, t: (0, 0)),              # folded dense W
            pl.BlockSpec((AAH, AAH), lambda b, t: (0, 0)),            # segment-mean mat
            pl.BlockSpec((AAH, AA), lambda b, t: (0, 0)),             # out_proj sel
            pl.BlockSpec((4, AAH), lambda b, t: (0, 0)),              # merged vectors
        ],
        out_specs=pl.BlockSpec((1, AA, TS * S), lambda b, t: (b, 0, t)),
        compiler_params=pltpu.CompilerParams(
            dimension_semantics=("parallel", "parallel"),
            vmem_limit_bytes=48 * 1024 * 1024),
    )(x, w_all, m_seg, wsel, vecs)

    # interleave (b, a1, a2, s1, s2) -> (b, s1*A+a1, s2*A+a2) and symmetrize, fused in XLA
    pre = pre.reshape(B, A, A, S, S)
    y = jnp.transpose(pre, (0, 3, 1, 4, 2)).reshape(B, L, L)
    return 0.5 * (y + jnp.swapaxes(y, -1, -2))


def distance_head_reference(x, params, atom_level):
    # Plain-JAX reference reproducing the PyTorch forward exactly.
    B, S, _, H = x.shape
    A = atom_level
    L = S * A
    param = params["parameter"].reshape(1, 1, A, 1, A, H)
    e = x[:, :, None, :, None, :] * param                      # (B,S,A,S,A,H)
    e = e.reshape(B, L, L, H)
    h = e @ params["dense_w"] + params["dense_b"]
    h = _gelu_tanh(h)
    mean = jnp.mean(h, axis=-1, keepdims=True)
    var = jnp.mean(jnp.square(h - mean), axis=-1, keepdims=True)
    hn = (h - mean) * jax.lax.rsqrt(var + 1e-5)
    hn = hn * params["ln_gamma"] + params["ln_beta"]
    y = jnp.sum(hn * params["out_w"], axis=-1) + params["out_b"][0]   # (B,L,L)
    return 0.5 * (y + jnp.swapaxes(y, -1, -2))


if __name__ == "__main__":
    B, S, H, A = 2, 8, 32, 2   # bsz=2, seq_len=8, heads=32, atom_level=2

    key = jax.random.PRNGKey(0)
    k1, k2, k3, k4, k5, k6 = jax.random.split(key, 6)

    params = {
        # nn.Linear(heads, heads): weight stored directly as (in, out)
        "dense_w": jax.random.normal(k1, (H, H), jnp.float32) / jnp.sqrt(H),
        "dense_b": 0.02 * jax.random.normal(k2, (H,), jnp.float32),
        # nn.LayerNorm(heads)
        "ln_gamma": jnp.ones((H,), jnp.float32),
        "ln_beta": jnp.zeros((H,), jnp.float32),
        # nn.Linear(heads, 1)
        "out_w": jax.random.normal(k3, (H,), jnp.float32) / jnp.sqrt(H),
        "out_b": 0.1 * jax.random.normal(k5, (1,), jnp.float32),
        # nn.Parameter(torch.ones(1,1,A,1,A,heads)), perturbed here to exercise the fold
        "parameter": 1.0 + 0.1 * jax.random.normal(k6, (A, A, H), jnp.float32),
    }

    x = jax.random.normal(k4, (B, S, S, H), jnp.float32)

    out = distance_head_forward(x, params, atom_level=A)
    out = jax.block_until_ready(out)

    ref = distance_head_reference(x, params, atom_level=A)
    assert out.shape == (B, S * A, S * A)
    assert jnp.allclose(out, ref, atol=1e-4, rtol=1e-4), "mismatch vs reference"

    print("KERNEL_OK")
</pallas_src>

<mosaic_0001>
module attributes {stable_mosaic.version = 11 : i64} {
  func.func @_distance_head_kernel(%arg0: i32, %arg1: i32, %arg2: memref<1x8x8x32xf32, #tpu.memory_space<vmem>>, %arg3: memref<32x128xf32, #tpu.memory_space<vmem>>, %arg4: memref<128x128xf32, #tpu.memory_space<vmem>>, %arg5: memref<128x4xf32, #tpu.memory_space<vmem>>, %arg6: memref<4x128xf32, #tpu.memory_space<vmem>>, %arg7: memref<1x4x64xf32, #tpu.memory_space<vmem>>) attributes {dimension_semantics = [#tpu.dimension_semantics<parallel>, #tpu.dimension_semantics<parallel>], iteration_bounds = array<i64: 2, 1>, scalar_prefetch = 0 : i64, scratch_operands = 0 : i64, tpu.core_type = #tpu.core_type<tc>, window_params = [{transform_indices = @transform_0, window_bounds = array<i64: 1, 8, 8, 32>}, {pipeline_mode = #tpu.pipeline_mode<synchronous>, transform_indices = @transform_1, window_bounds = array<i64: 32, 128>}, {pipeline_mode = #tpu.pipeline_mode<synchronous>, transform_indices = @transform_2, window_bounds = array<i64: 128, 128>}, {pipeline_mode = #tpu.pipeline_mode<synchronous>, transform_indices = @transform_3, window_bounds = array<i64: 128, 4>}, {pipeline_mode = #tpu.pipeline_mode<synchronous>, transform_indices = @transform_4, window_bounds = array<i64: 4, 128>}, {transform_indices = @transform_5, window_bounds = array<i64: 1, 4, 64>}]} {
    %c0 = arith.constant 0 : index
    %c0_0 = arith.constant 0 : index
    %c0_1 = arith.constant 0 : index
    %c0_2 = arith.constant 0 : index
    %0 = vector.load %arg2[%c0, %c0_0, %c0_1, %c0_2] : memref<1x8x8x32xf32, #tpu.memory_space<vmem>>, vector<1x8x8x32xf32>
    %1 = vector.shape_cast %0 : vector<1x8x8x32xf32> to vector<8x8x32xf32>
    %2 = vector.shape_cast %1 : vector<8x8x32xf32> to vector<64x32xf32>
    %c0_3 = arith.constant 0 : index
    %c0_4 = arith.constant 0 : index
    %3 = vector.load %arg3[%c0_3, %c0_4] : memref<32x128xf32, #tpu.memory_space<vmem>>, vector<32x128xf32>
    %cst = arith.constant dense<0.000000e+00> : vector<64x128xf32>
    %4 = tpu.matmul %2, %3, %cst {dimension_numbers = #tpu.dot_dimension_numbers<[1], [0], [0], [1], [0, 0, 1, 1], [], []>} : vector<64x32xf32>, vector<32x128xf32>, vector<64x128xf32> -> vector<64x128xf32>
    %c0_5 = arith.constant 0 : index
    %c0_6 = arith.constant 0 : index
    %5 = vector.load %arg6[%c0_5, %c0_6] : memref<4x128xf32, #tpu.memory_space<vmem>>, vector<1x128xf32>
    %6 = vector.broadcast %5 : vector<1x128xf32> to vector<64x128xf32>
    %7 = arith.addf %4, %6 : vector<64x128xf32>
    %cst_7 = arith.constant 5.000000e-01 : f32
    %8 = vector.broadcast %cst_7 : f32 to vector<64x128xf32>
    %9 = arith.mulf %8, %7 : vector<64x128xf32>
    %cst_8 = arith.constant 4.471500e-02 : f32
    %10 = vector.broadcast %cst_8 : f32 to vector<64x128xf32>
    %11 = arith.mulf %10, %7 : vector<64x128xf32>
    %12 = arith.mulf %11, %7 : vector<64x128xf32>
    %13 = arith.mulf %12, %7 : vector<64x128xf32>
    %14 = arith.addf %7, %13 : vector<64x128xf32>
    %cst_9 = arith.constant 0.797884583 : f32
    %15 = vector.broadcast %cst_9 : f32 to vector<64x128xf32>
    %16 = arith.mulf %15, %14 : vector<64x128xf32>
    %17 = math.tanh %16 : vector<64x128xf32>
    %cst_10 = arith.constant 1.000000e+00 : f32
    %18 = vector.broadcast %cst_10 : f32 to vector<64x128xf32>
    %19 = arith.addf %18, %17 : vector<64x128xf32>
    %20 = arith.mulf %9, %19 : vector<64x128xf32>
    %c0_11 = arith.constant 0 : index
    %c0_12 = arith.constant 0 : index
    %21 = vector.load %arg4[%c0_11, %c0_12] : memref<128x128xf32, #tpu.memory_space<vmem>>, vector<128x128xf32>
    %cst_13 = arith.constant dense<0.000000e+00> : vector<64x128xf32>
    %22 = tpu.matmul %20, %21, %cst_13 {dimension_numbers = #tpu.dot_dimension_numbers<[1], [0], [0], [1], [0, 0, 1, 1], [], []>} : vector<64x128xf32>, vector<128x128xf32>, vector<64x128xf32> -> vector<64x128xf32>
    %23 = arith.subf %20, %22 : vector<64x128xf32>
    %24 = arith.mulf %23, %23 : vector<64x128xf32>
    %c0_14 = arith.constant 0 : index
    %c0_15 = arith.constant 0 : index
    %25 = vector.load %arg4[%c0_14, %c0_15] : memref<128x128xf32, #tpu.memory_space<vmem>>, vector<128x128xf32>
    %cst_16 = arith.constant dense<0.000000e+00> : vector<64x128xf32>
    %26 = tpu.matmul %24, %25, %cst_16 {dimension_numbers = #tpu.dot_dimension_numbers<[1], [0], [0], [1], [0, 0, 1, 1], [], []>} : vector<64x128xf32>, vector<128x128xf32>, vector<64x128xf32> -> vector<64x128xf32>
    %cst_17 = arith.constant 9.99999974E-6 : f32
    %27 = vector.broadcast %cst_17 : f32 to vector<64x128xf32>
    %28 = arith.addf %26, %27 : vector<64x128xf32>
    %29 = math.rsqrt %28 : vector<64x128xf32>
    %30 = arith.mulf %23, %29 : vector<64x128xf32>
    %c1 = arith.constant 1 : index
    %c0_18 = arith.constant 0 : index
    %31 = vector.load %arg6[%c1, %c0_18] : memref<4x128xf32, #tpu.memory_space<vmem>>, vector<1x128xf32>
    %32 = vector.broadcast %31 : vector<1x128xf32> to vector<64x128xf32>
    %33 = arith.mulf %30, %32 : vector<64x128xf32>
    %c2 = arith.constant 2 : index
    %c0_19 = arith.constant 0 : index
    %34 = vector.load %arg6[%c2, %c0_19] : memref<4x128xf32, #tpu.memory_space<vmem>>, vector<1x128xf32>
    %35 = vector.broadcast %34 : vector<1x128xf32> to vector<64x128xf32>
    %36 = arith.addf %33, %35 : vector<64x128xf32>
    %c0_20 = arith.constant 0 : index
    %c0_21 = arith.constant 0 : index
    %37 = vector.load %arg5[%c0_20, %c0_21] : memref<128x4xf32, #tpu.memory_space<vmem>>, vector<128x4xf32>
    %cst_22 = arith.constant dense<0.000000e+00> : vector<64x4xf32>
    %38 = tpu.matmul %36, %37, %cst_22 {dimension_numbers = #tpu.dot_dimension_numbers<[1], [0], [0], [1], [0, 0, 1, 1], [], []>} : vector<64x128xf32>, vector<128x4xf32>, vector<64x4xf32> -> vector<64x4xf32>
    %39 = tpu.transpose %38, [1, 0] : vector<64x4xf32> -> vector<4x64xf32>
    %c3 = arith.constant 3 : index
    %c0_23 = arith.constant 0 : index
    %40 = vector.load %arg6[%c3, %c0_23] : memref<4x128xf32, #tpu.memory_space<vmem>>, vector<1x1xf32>
    %41 = vector.broadcast %40 : vector<1x1xf32> to vector<4x64xf32>
    %42 = arith.addf %39, %41 : vector<4x64xf32>
    %c0_24 = arith.constant 0 : index
    %c0_25 = arith.constant 0 : index
    %c0_26 = arith.constant 0 : index
    %43 = vector.load %arg7[%c0_24, %c0_25, %c0_26] : memref<1x4x64xf32, #tpu.memory_space<vmem>>, vector<1x4x64xf32>
    %44 = vector.shape_cast %43 : vector<1x4x64xf32> to vector<4x64xf32>
    %45 = vector.shape_cast %42 : vector<4x64xf32> to vector<1x4x64xf32>
    tpu.vector_store %arg7[%c0_24, %c0_25, %c0_26], %45 {strides = array<i32>} : memref<1x4x64xf32, #tpu.memory_space<vmem>>, vector<1x4x64xf32>,
    return
  }
  func.func @transform_0(%arg0: i32, %arg1: i32) -> (i32, i32, i32, i32) {
    %c0_i32 = arith.constant 0 : i32
    %c0_i32_0 = arith.constant 0 : i32
    %c0_i32_1 = arith.constant 0 : i32
    return %arg0, %arg1, %c0_i32, %c0_i32_0 : i32, i32, i32, i32
  }
  func.func @transform_1(%arg0: i32, %arg1: i32) -> (i32, i32) {
    %c0_i32 = arith.constant 0 : i32
    %c0_i32_0 = arith.constant 0 : i32
    %c0_i32_1 = arith.constant 0 : i32
    return %c0_i32, %c0_i32_0 : i32, i32
  }
  func.func @transform_2(%arg0: i32, %arg1: i32) -> (i32, i32) {
    %c0_i32 = arith.constant 0 : i32
    %c0_i32_0 = arith.constant 0 : i32
    %c0_i32_1 = arith.constant 0 : i32
    return %c0_i32, %c0_i32_0 : i32, i32
  }
  func.func @transform_3(%arg0: i32, %arg1: i32) -> (i32, i32) {
    %c0_i32 = arith.constant 0 : i32
    %c0_i32_0 = arith.constant 0 : i32
    %c0_i32_1 = arith.constant 0 : i32
    return %c0_i32, %c0_i32_0 : i32, i32
  }
  func.func @transform_4(%arg0: i32, %arg1: i32) -> (i32, i32) {
    %c0_i32 = arith.constant 0 : i32
    %c0_i32_0 = arith.constant 0 : i32
    %c0_i32_1 = arith.constant 0 : i32
    return %c0_i32, %c0_i32_0 : i32, i32
  }
  func.func @transform_5(%arg0: i32, %arg1: i32) -> (i32, i32, i32) {
    %c0_i32 = arith.constant 0 : i32
    %c0_i32_0 = arith.constant 0 : i32
    return %arg0, %c0_i32, %arg1 : i32, i32, i32
  }
}

</mosaic_0001>

<bundles_post_ra>
// kernel: tpu_custom_call.1
= control target key start
LH: loop header
LB: loop body
LE: loop exit
PB: predicated region body
PF: predicated region fallthrough
CT: control target
= control target key end

     0   :  { %10 = vsyncpa [#allocation3], 0  ;;  %s1926_s0 = inlined_call_operand.vmem [shape: f32[2,8,8,32], index: 0, kind: input, shape index: {}]   ;;  %s1927_s1 = inlined_call_operand.hbm [shape: f32[32,128], index: 1, kind: input, shape index: {}]   ;;  %s1928_s2 = inlined_call_operand.hbm [shape: f32[128,128], index: 2, kind: input, shape index: {}]   ;;  %s1929_s3 = inlined_call_operand.vmem [shape: f32[128,4], index: 3, kind: input, shape index: {}]   ;;  %s1930_s4 = inlined_call_operand.vmem [shape: f32[4,128], index: 4, kind: input, shape index: {}]   ;;  %s1931_s5 = inlined_call_operand.hbm [shape: f32[2,4,64], index: 5, kind: output, shape index: {}]  }
   0x1   :  { %11 = vsyncpa [#allocation6], 0 }
   0x2   :  { %12 = vsyncpa [#allocation4], 0 }
   0x3   :  { %14 = vsyncpa [#allocation4 + $0x1], 0  ;;  %s1640_s18 = smov 0   ;;  %s1642_s19 = smov 0  }
   0x4   :  { %s1644_s20 = smov 0   ;;  %s1646_s21 = smov 0  }
   0x5   :  { %s1648_s22 = smov 0   ;;  %s1650_s23 = smov 0  }
   0x6 LB: > { %s1058_s24 = sadd.s32 4294967295, %s1603_s23   ;;  %s1059_s25 = sadd.s32 4294967294, %s1603_s23   ;;  %s1603_s23 = sphi %s1650_s23, %s20_s23   ;;  %s1599_s22 = sphi %s1648_s22, %s1944_s22   ;;  %s1595_s21 = sphi %s1646_s21, %s1943_s21   ;;  %s1591_s20 = sphi %s1644_s20, %s1942_s20   ;;  %s1587_s19 = sphi %s1642_s19, %s1941_s19   ;;  %s1583_s18 = sphi %s1640_s18, %s1940_s18  }
   0x7   : > { %s32_s26 = sadd.s32 1, %s1599_s22  ;;  %s153_s27 = sadd.s32 1, %s1591_s20 }
   0x8   : > { %p34_p0 = scmp.ge.s32.totalorder %s32_s26, 2  ;;  %p163_p1 = scmp.ne.s32.totalorder %s1591_s20, %s1587_s19 }
   0x9   : > { %p164_p2 = scmp.eq.s32.totalorder %s1058_s24, 1  ;;  %p169_p3 = scmp.ne.s32.totalorder %s1587_s19, %s1583_s18 }
   0xa   : > { %s1946_s26 = smov (%p34_p0, %s32_s26), 0  ;;  %p170_p5 = scmp.eq.s32.totalorder %s1059_s25, 1 }
   0xb   : > { %p1680_p4 = por %p164_p2, %p163_p1  ;;  %s148_s29 = ssub.s32 %s1599_s22, %s1946_s26 }
   0xc   : > { %p1060_p6 = scmp.ge.s32.totalorder %s1603_s23, 1  ;;  %p151_p7 = scmp.eq.s32.totalorder %s148_s29, 0 }
   0xd   : > { %s1933_s28 = scalar_select %p1680_p4, 1, 0 }
   0xe   : > { %p1687_p8 = por %p170_p5, %p169_p3  ;;  %p177_p9 = scmp.lt.s32.totalorder %s1603_s23, 3 }
   0xf   : > { %s1693_s6 = scalar_select %p151_p7, %s1591_s20, %s153_s27  }
  0x10   : > { %s1934_s30 = scalar_select %p1687_p8, 1, 0 }
  0x11   : > { %p1695_p10 = pnand %p1060_p6, %p177_p9  ;;  %p1699_p11 = scmp.eq.s32.totalorder %s1058_s24, 0 }
  0x12   : > { %s1605_s9 = smov [#allocation2]   ;;  %s1606_s12 = smov [#allocation5]  }
  0x13   : > { %p1366_p12 = pneg %p1695_p10  ;;  %s189_s10 = sshll.u32 %s1605_s9, 4  ;;  %s190_s10 = int_to_ptr.vmem [resolvable:$true] %s189_s10 }
  0x14   : > { %s202_s13 = sshll.u32 %s1606_s12, 4  ;;  %s1478_s14 = scalar_lea.vmem %s190_s10, 512  ;;  %s203_s13 = int_to_ptr.vmem [resolvable:$true] %s202_s13 }
  0x15   : > { %p1707_p13 = pnand %p1699_p11, %p1366_p12  ;;  %p1479_p1 = scmp.ne.s32.totalorder %s190_s10, %s1478_s14 }
  0x16   : > { %p1486_p5 = scmp.lt.s32.totalorder %s190_s10, %s190_s10  ;;  %p1487_p6 = scmp.lt.s32.totalorder %s1478_s14, %s1478_s14 }
  0x17   : > { %p1469_p0 = pneg %p1707_p13 }
  0x18   : > { %p1488_p7 = por %p1487_p6, %p1486_p5 }
  0x19   : > { %p1481_p2 = pnand %p1479_p1, %p1469_p0 }
  0x1b   : > { %p1482_p3 = pneg %p1481_p2 }
  0x1d   : > { %p1489_p9 = pnand %p1488_p7, %p1482_p3 }
  0x1f   : > { %1492 = shalt.err (!%p1489_p9)
}
  0x20   : > { %s1607_s15 = smov 128   ;;  %s1608_s16 = smov 8  }
  0x21   : > { %1369 = dma.hbm_to_vmem [thread:$0]  (!%p1707_p13), %s1927_s1, 512, %s190_s10, [#allocation3], %s1607_s15, %s1607_s15, %s1608_s16  }
  0x22   : > { %s1504_s25 = scalar_lea.vmem %s203_s13, 2048  ;;  %p1512_p8 = scmp.lt.s32.totalorder %s203_s13, %s203_s13 }
  0x23   : > { %p1505_p12 = scmp.ne.s32.totalorder %s203_s13, %s1504_s25  ;;  %p1513_p4 = scmp.lt.s32.totalorder %s1504_s25, %s1504_s25 }
  0x25   : > { %p1507_p1 = pnand %p1505_p12, %p1469_p0  ;;  %p1514_p5 = por %p1513_p4, %p1512_p8 }
  0x27   : > { %p1508_p2 = pneg %p1507_p1 }
  0x29   : > { %p1515_p3 = pnand %p1514_p5, %p1508_p2 }
  0x2b   : > { %1518 = shalt.err (!%p1515_p3)
}
  0x2c   : > { %1372 = dma.hbm_to_vmem [thread:$0]  (!%p1707_p13), %s1928_s2, 2048, %s203_s13, [#allocation6], %s1607_s15, %s1607_s15, %s1608_s16  }
  0x2d   : > { %237 = sbr.rel (%p1695_p10) target bundleno = 1041 (0x411), region = 40 }
  0x32   : > { %1570 = dma.done.wait (%p1699_p11), [#allocation3], 512  }
  0x33   : > { %1572 = vsyncadd (%p1699_p11), [#allocation3], 4294966784 }
  0x34   : > { %1574 = dma.done.wait (%p1699_p11), [#allocation6], 2048  }
  0x35   : > { %1576 = vsyncadd (%p1699_p11), [#allocation6], 4294965248  ;;  %p274_p4 = scmp.lt.s32.totalorder %s1595_s21, 1  ;;  %vm300_vm0 = vcmask 261120   ;;  %v294_v0 = vld [vmem:[#allocation2 + $0x18] sm:$0xff]  ;;  %v293_v1 = vld [vmem:[#allocation2 + $0x10] sm:$0xff] }
  0x36   : > { %1170 = vmatprep.subr.mxu0 %v294_v0  ;;  %v292_v3 = vld [vmem:[#allocation2 + $0x8] sm:$0xff]  ;;  %v291_v4 = vld [vmem:[#allocation2] sm:$0xff]  ;;  %v517_v12 = vld [vmem:[#allocation5 + $0x78] sm:$0xff]  ;;  %s1082_s7 = sshll.u32 %s1595_s21, 6  ;;  %vm945_vm1 = vcmask 519168   ;;  %p1938_p10 = scmp.ne.s32.totalorder %s1933_s28, 0 }
  0x37   : > { %s275_s9 = scalar_select %p274_p4, %s1595_s21, 1  ;;  %1171 = vmatpush3.msra.mxu0 %v294_v0  ;;  %1190 = vmatprep.subr.mxu1 %v517_v12  ;;  %v516_v13 = vld [vmem:[#allocation5 + $0x70] sm:$0xff]  ;;  %v515_v14 = vld [vmem:[#allocation5 + $0x68] sm:$0xff]  ;;  %v514_v15 = vld [vmem:[#allocation5 + $0x60] sm:$0xff] }
  0x38   : > { %1172 = vmatprep.subr.mxu0 %v293_v1  ;;  %1191 = vmatpush3.msra.mxu1 %v517_v12  ;;  %v513_v16 = vld [vmem:[#allocation5 + $0x58] sm:$0xff]  ;;  %v512_v17 = vld [vmem:[#allocation5 + $0x50] sm:$0xff]  ;;  %v511_v18 = vld [vmem:[#allocation5 + $0x48] sm:$0xff]  ;;  %s960_s15 = scalar_lea.hbm %s1931_s5, %s1082_s7  ;;  %s1609_s24 = smov [#allocation7]  }
  0x39   : > { %s1085_s10 = sshll.u32 %s275_s9, 6  ;;  %1173 = vmatpush3.msra.mxu0 %v293_v1  ;;  %1192 = vmatprep.subr.mxu1 %v516_v13  ;;  %v510_v19 = vld [vmem:[#allocation5 + $0x40] sm:$0xff]  ;;  %v509_v20 = vld [vmem:[#allocation5 + $0x38] sm:$0xff]  ;;  %v508_v21 = vld [vmem:[#allocation5 + $0x30] sm:$0xff]  ;;  %s270_s9 = sand.u32 1, %s1587_s19  }
  0x3a   : > { %s281_s12 = scalar_lea.vmem %s1926_s0, %s1085_s10  ;;  %1174 = vmatprep.subr.mxu0 %v292_v3  ;;  %1193 = vmatpush3.msra.mxu1 %v516_v13  ;;  %v507_v22 = vld [vmem:[#allocation5 + $0x28] sm:$0xff]  ;;  %v506_v23 = vld [vmem:[#allocation5 + $0x20] sm:$0xff]  ;;  %v505_v24 = vld [vmem:[#allocation5 + $0x18] sm:$0xff]  ;;  %s1067_s10 = sshll.u32 %s270_s9, 2 }
  0x3b   : > { %v283_v2 = vld [vmem:[%s281_s12] sm:$0xff]  ;;  %1175 = vmatpush3.msra.mxu0 %v292_v3  ;;  %v284_v5 = vld [vmem:[%s281_s12 + $0x8] sm:$0xff]  ;;  %v285_v6 = vld [vmem:[%s281_s12 + $0x10] sm:$0xff]  ;;  %1194 = vmatprep.subr.mxu1 %v515_v14  ;;  %s948_s16 = scalar_lea.sflag [#allocation4], %s270_s9  ;;  %s1523_s25 = sshll.u32 %s1609_s24, 4  ;;  %s1524_s25 = int_to_ptr.vmem [resolvable:$false] %s1523_s25 }
  0x3c   : > { %1178 = vmatprep.mubr.msk.f32.mxu0 %vm300_vm0, %v283_v2  ;;  %1176 = vmatprep.subr.mxu0 %v291_v4  ;;  %v286_v7 = vld [vmem:[%s281_s12 + $0x18] sm:$0xff]  ;;  %v287_v8 = vld [vmem:[%s281_s12 + $0x20] sm:$0xff]  ;;  %v288_v9 = vld [vmem:[%s281_s12 + $0x28] sm:$0xff]  ;;  %s1525_s21 = scalar_lea.vmem %s1524_s25, 128 }
  0x3d   : > { %1177 = vmatpush3.msra.mxu0 %v291_v4  ;;  %v289_v10 = vld [vmem:[%s281_s12 + $0x30] sm:$0xff]  ;;  %v290_v11 = vld [vmem:[%s281_s12 + $0x38] sm:$0xff]  ;;  %1195 = vmatpush3.msra.mxu1 %v515_v14  ;;  %v503_v26 = vld [vmem:[#allocation5 + $0x8] sm:$0xff]  ;;  %s272_s12 = scalar_lea.vmem [#allocation7], %s1067_s10 }
  0x3e   : > { %1179 = vmatmul.mubr.msk.f32.vlgmr.msra.gmra.mxu0 %vm300_vm0, %v284_v5  ;;  %1234 = vmatprep.subr.mxu0 %v517_v12  ;;  %v504_v25 = vld [vmem:[#allocation5 + $0x10] sm:$0xff]  ;;  %v502_v27 = vld [vmem:[#allocation5] sm:$0xff]  ;;  %s962_s8 = sshll.u32 %s272_s12, 4  ;;  %s963_s8 = int_to_ptr.vmem [resolvable:$true] %s962_s8 }
  0x3f   : > { %1181 = vmatprep.mubr.msk.f32.mxu0 %vm300_vm0, %v285_v6  ;;  %1235 = vmatpush3.msra.mxu0 %v517_v12  ;;  %v1070_v28 = vld [vmem:[%s1930_s4] ss:$0 sm:$0xff]  ;;  %s1519_s17 = scalar_lea.vmem %s963_s8, 64  ;;  %p1526_p0 = scmp.lt.s32.totalorder %s963_s8, %s1524_s25 }
  0x40   : > { %1236 = vmatprep.subr.mxu0 %v516_v13  ;;  %1196 = vmatprep.subr.mxu1 %v514_v15  ;;  %p1520_p8 = scmp.ne.s32.totalorder %s963_s8, %s1519_s17  ;;  %p1527_p6 = scmp.lt.s32.totalorder %s1525_s21, %s1519_s17 }
  0x41   : > { %1237 = vmatpush3.msra.mxu0 %v516_v13  ;;  %1197 = vmatpush3.msra.mxu1 %v514_v15 }
  0x42   : > { %1182 = vmatmul.mubr.msk.f32.gmra.mxu0 %vm300_vm0, %v286_v7  ;;  %1238 = vmatprep.subr.mxu0 %v515_v14  ;;  %p1521_p11 = pnand %p1520_p8, %p1938_p10  ;;  %p1528_p7 = por %p1527_p6, %p1526_p0 }
  0x43   : > { %1184 = vmatprep.mubr.msk.f32.mxu0 %vm300_vm0, %v287_v8  ;;  %1239 = vmatpush3.msra.mxu0 %v515_v14 }
  0x44   : > { %1240 = vmatprep.subr.mxu0 %v514_v15  ;;  %1198 = vmatprep.subr.mxu1 %v513_v16  ;;  %p1522_p13 = pneg %p1521_p11 }
  0x45   : > { %1241 = vmatpush3.msra.mxu0 %v514_v15  ;;  %1199 = vmatpush3.msra.mxu1 %v513_v16 }
  0x46   : > { %1185 = vmatmul.mubr.msk.f32.gmra.mxu0 %vm300_vm0, %v288_v9  ;;  %1242 = vmatprep.subr.mxu0 %v513_v16  ;;  %p1529_p9 = pnand %p1528_p7, %p1522_p13 }
  0x47   : > { %1187 = vmatprep.mubr.msk.f32.mxu0 %vm300_vm0, %v289_v10  ;;  %1243 = vmatpush3.msra.mxu0 %v513_v16 }
  0x48   : > { %1200 = vmatprep.subr.mxu1 %v512_v17  ;;  %1244 = vmatprep.subr.mxu0 %v512_v17 }
  0x49   : > { %1201 = vmatpush3.msra.mxu1 %v512_v17  ;;  %1245 = vmatpush3.msra.mxu0 %v512_v17 }
  0x4a   : > { %1188 = vmatmul.mubr.msk.f32.gmra.mxu0 %vm300_vm0, %v290_v11  ;;  %1202 = vmatprep.subr.mxu1 %v511_v18 }
  0x4b   : > { %1246 = vmatprep.subr.mxu0 %v511_v18  ;;  %1203 = vmatpush3.msra.mxu1 %v511_v18 }
  0x4c   : > { %1247 = vmatpush3.msra.mxu0 %v511_v18  ;;  %1204 = vmatprep.subr.mxu1 %v510_v19 }
  0x4d   : > { %1248 = vmatprep.subr.mxu0 %v510_v19  ;;  %1205 = vmatpush3.msra.mxu1 %v510_v19 }
  0x4e   : > { %1249 = vmatpush3.msra.mxu0 %v510_v19  ;;  %1206 = vmatprep.subr.mxu1 %v509_v20 }
  0x4f   : > { %1250 = vmatprep.subr.mxu0 %v509_v20  ;;  %1207 = vmatpush3.msra.mxu1 %v509_v20 }
  0x50   : > { %1251 = vmatpush3.msra.mxu0 %v509_v20  ;;  %1208 = vmatprep.subr.mxu1 %v508_v21 }
  0x51   : > { %1252 = vmatprep.subr.mxu0 %v508_v21  ;;  %1209 = vmatpush3.msra.mxu1 %v508_v21 }
  0x52   : > { %1253 = vmatpush3.msra.mxu0 %v508_v21  ;;  %1210 = vmatprep.subr.mxu1 %v507_v22 }
  0x53   : > { %1254 = vmatprep.subr.mxu0 %v507_v22  ;;  %1211 = vmatpush3.msra.mxu1 %v507_v22 }
  0x54   : > { %1255 = vmatpush3.msra.mxu0 %v507_v22  ;;  %1212 = vmatprep.subr.mxu1 %v506_v23 }
  0x55   : > { %1256 = vmatprep.subr.mxu0 %v506_v23  ;;  %1213 = vmatpush3.msra.mxu1 %v506_v23 }
  0x56   : > { %1257 = vmatpush3.msra.mxu0 %v506_v23  ;;  %1214 = vmatprep.subr.mxu1 %v505_v24 }
  0x57   : > { %1258 = vmatprep.subr.mxu0 %v505_v24  ;;  %1215 = vmatpush3.msra.mxu1 %v505_v24 }
  0x58   : > { %1259 = vmatpush3.msra.mxu0 %v505_v24  ;;  %1216 = vmatprep.subr.mxu1 %v504_v25 }
  0x59   : > { %1260 = vmatprep.subr.mxu0 %v504_v25  ;;  %1217 = vmatpush3.msra.mxu1 %v504_v25 }
  0x5a   : > { %1261 = vmatpush3.msra.mxu0 %v504_v25  ;;  %1218 = vmatprep.subr.mxu1 %v503_v26 }
  0x5b   : > { %1262 = vmatprep.subr.mxu0 %v503_v26  ;;  %1219 = vmatpush3.msra.mxu1 %v503_v26 }
  0x5c   : > { %1263 = vmatpush3.msra.mxu0 %v503_v26  ;;  %1220 = vmatprep.subr.mxu1 %v502_v27 }
  0x5d   : > { %1264 = vmatprep.subr.mxu0 %v502_v27  ;;  %1221 = vmatpush3.msra.mxu1 %v502_v27 }
  0x5e   : > { %1265 = vmatpush3.msra.mxu0 %v502_v27 }
  0xfe   : > { %v1180_v29 = vpop.f32.mrf.mxu0 }
  0xff   : > { %v1755_v30 = vadd.f32 %v1180_v29, %v1070_v28 }
 0x100   : > { %v391_v31 = vpop.f32.mrf.mxu0 }
 0x101   : > { %v439_v32 = vmul.f32 0.044715, %v1755_v30  ;;  %v392_v33 = vadd.f32 %v1070_v28, %v391_v31  ;;  %v431_v26 = vmul.f32 0.5, %v1755_v30 }
 0x102   : > { %v1183_v34 = vpop.f32.mrf.mxu0 }
 0x103   : > { %v447_v35 = vmul.f32 %v439_v32, %v1755_v30  ;;  %v438_v36 = vmul.f32 0.044715, %v392_v33  ;;  %v1759_v37 = vadd.f32 %v1183_v34, %v1070_v28  ;;  %v430_v24 = vmul.f32 0.5, %v392_v33 }
 0x104   : > { %v401_v38 = vpop.f32.mrf.mxu0 }
 0x105   : > { %v441_v39 = vmul.f32 0.044715, %v1759_v37  ;;  %v1762_v40 = vadd.f32 %v1070_v28, %v401_v38  ;;  %v446_v41 = vmul.f32 %v438_v36, %v392_v33  ;;  %v455_v42 = vmul.f32 %v447_v35, %v1755_v30 }
 0x106   : > { %v1186_v43 = vpop.f32.mrf.mxu0  ;;  %v433_v38 = vmul.f32 0.5, %v1759_v37 }
 0x107   : > { %v449_v44 = vmul.f32 %v441_v39, %v1759_v37  ;;  %v440_v45 = vmul.f32 0.044715, %v1762_v40  ;;  %v1767_v46 = vadd.f32 %v1186_v43, %v1070_v28  ;;  %v454_v47 = vmul.f32 %v446_v41, %v392_v33 }
 0x108   : > { %v411_v48 = vpop.f32.mrf.mxu0  ;;  %v463_v49 = vadd.f32 %v455_v42, %v1755_v30  ;;  %v432_v34 = vmul.f32 0.5, %v1762_v40 }
 0x109   : > { %v448_v50 = vmul.f32 %v440_v45, %v1762_v40  ;;  %v443_v51 = vmul.f32 0.044715, %v1767_v46  ;;  %v412_v52 = vadd.f32 %v1070_v28, %v411_v48  ;;  %v462_v53 = vadd.f32 %v454_v47, %v392_v33 }
 0x10a   : > { %v1189_v54 = vpop.f32.mrf.mxu0  ;;  %v471_v55 = vmul.f32 0.7978846, %v463_v49  ;;  %v457_v56 = vmul.f32 %v449_v44, %v1759_v37  ;;  %v435_v47 = vmul.f32 0.5, %v1767_v46 }
 0x10b   : > { %v451_v57 = vmul.f32 %v443_v51, %v1767_v46  ;;  %v442_v58 = vmul.f32 0.044715, %v412_v52  ;;  %v1774_v59 = vadd.f32 %v1189_v54, %v1070_v28  ;;  %v470_v60 = vmul.f32 0.7978846, %v462_v53  ;;  %v801_v54 = vld [vmem:[%s1929_s3 + $0x78] sm:$0xff] }
 0x10c   : > { %v421_v61 = vpop.f32.mrf.mxu0  ;;  %1435 = vtanh.f32 %v471_v55  ;;  %v456_v62 = vmul.f32 %v448_v50, %v1762_v40  ;;  %v465_v63 = vadd.f32 %v457_v56, %v1759_v37  ;;  %v434_v33 = vmul.f32 0.5, %v412_v52  ;;  %1278 = vmatprep.subr.mxu0 %v801_v54  ;;  %1322 = vmatprep.subr.mxu1 %v801_v54  ;;  %v799_v55 = vld [vmem:[%s1929_s3 + $0x68] sm:$0xff] }
 0x10d   : > { %v450_v0 = vmul.f32 %v442_v58, %v412_v52  ;;  %v445_v1 = vmul.f32 0.044715, %v1774_v59  ;;  %v422_v2 = vadd.f32 %v1070_v28, %v421_v61  ;;  %1437 = vtanh.f32 %v470_v60 }
 0x10e   : > { %v464_v3 = vadd.f32 %v456_v62, %v1762_v40  ;;  %v473_v4 = vmul.f32 0.7978846, %v465_v63  ;;  %v459_v5 = vmul.f32 %v451_v57, %v1767_v46  ;;  %v437_v53 = vmul.f32 0.5, %v1774_v59 }
 0x10f   : > { %v453_v6 = vmul.f32 %v445_v1, %v1774_v59  ;;  %v444_v7 = vmul.f32 0.044715, %v422_v2  ;;  %v458_v8 = vmul.f32 %v450_v0, %v412_v52  ;;  %v436_v40 = vmul.f32 0.5, %v422_v2 }
 0x110   : > { %v472_v9 = vmul.f32 0.7978846, %v464_v3  ;;  %1439 = vtanh.f32 %v473_v4  ;;  %v467_v10 = vadd.f32 %v459_v5, %v1767_v46  ;;  %v800_v46 = vld [vmem:[%s1929_s3 + $0x70] sm:$0xff] }
 0x111   : > { %v452_v11 = vmul.f32 %v444_v7, %v422_v2  ;;  %v466_v12 = vadd.f32 %v458_v8, %v412_v52  ;;  %v461_v13 = vmul.f32 %v453_v6, %v1774_v59 }
 0x112   : > { %1441 = vtanh.f32 %v472_v9  ;;  %v475_v14 = vmul.f32 0.7978846, %v467_v10 }
 0x113   : > { %v474_v15 = vmul.f32 0.7978846, %v466_v12  ;;  %v460_v16 = vmul.f32 %v452_v11, %v422_v2  ;;  %v469_v17 = vadd.f32 %v461_v13, %v1774_v59 }
 0x114   : > { %1443 = vtanh.f32 %v475_v14 }
 0x115   : > { %1445 = vtanh.f32 %v474_v15  ;;  %v468_v18 = vadd.f32 %v460_v16, %v422_v2  ;;  %v477_v19 = vmul.f32 0.7978846, %v469_v17  ;;  %v798_v16 = vld [vmem:[%s1929_s3 + $0x60] sm:$0xff]  ;;  %v797_v17 = vld [vmem:[%s1929_s3 + $0x58] sm:$0xff] }
 0x117   : > { %v476_v20 = vmul.f32 0.7978846, %v468_v18  ;;  %1447 = vtanh.f32 %v477_v19  ;;  %v796_v18 = vld [vmem:[%s1929_s3 + $0x50] sm:$0xff]  ;;  %v795_v19 = vld [vmem:[%s1929_s3 + $0x48] sm:$0xff] }
 0x119   : > { %v1436_v21 = vpop.eup %1435  ;;  %1449 = vtanh.f32 %v476_v20  ;;  %v794_v20 = vld [vmem:[%s1929_s3 + $0x40] sm:$0xff] }
 0x11a   : > { %v1438_v22 = vpop.eup %1437  ;;  %v487_v23 = vadd.f32 1.0, %v1436_v21  ;;  %v793_v21 = vld [vmem:[%s1929_s3 + $0x38] sm:$0xff] }
 0x11b   : > { %v486_v25 = vadd.f32 1.0, %v1438_v22  ;;  %v792_v22 = vld [vmem:[%s1929_s3 + $0x30] sm:$0xff] }
 0x11c   : > { %v495_v29 = vmul.f32 %v487_v23, %v431_v26  ;;  %v791_v23 = vld [vmem:[%s1929_s3 + $0x28] sm:$0xff]  ;;  %v788_v26 = vld [vmem:[%s1929_s3 + $0x10] sm:$0xff] }
 0x11d   : > { %v1440_v27 = vpop.eup %1439  ;;  %v494_v28 = vmul.f32 %v486_v25, %v430_v24  ;;  %v790_v24 = vld [vmem:[%s1929_s3 + $0x20] sm:$0xff]  ;;  %v789_v25 = vld [vmem:[%s1929_s3 + $0x18] sm:$0xff] }
 0x11e   : > { %v489_v32 = vadd.f32 1.0, %v1440_v27  ;;  %v787_v27 = vld [vmem:[%s1929_s3 + $0x8] sm:$0xff] }
 0x11f   : > { %v1442_v31 = vpop.eup %1441  ;;  %1222 = vmatprep.mubr.f32.mxu1 %v494_v28 }
 0x120   : > { %1223 = vmatmul.mubr.f32.vlgmr.msra.gmra.mxu1 %v495_v29  ;;  %v488_v35 = vadd.f32 1.0, %v1442_v31  ;;  %v497_v42 = vmul.f32 %v489_v32, %v433_v38 }
 0x121   : > { %v1444_v36 = vpop.eup %1443  ;;  %1338 = vmatpush3.msra.mxu1 %v801_v54 }
 0x122   : > { %v1446_v39 = vpop.eup %1445  ;;  %v496_v41 = vmul.f32 %v488_v35, %v432_v34  ;;  %v491_v44 = vadd.f32 1.0, %v1444_v36  ;;  %1323 = vmatprep.subr.mxu1 %v800_v46 }
 0x123   : > { %v490_v43 = vadd.f32 1.0, %v1446_v39  ;;  %1339 = vmatpush3.msra.mxu1 %v800_v46 }
 0x124   : > { %v1448_v30 = vpop.eup %1447  ;;  %1225 = vmatprep.mubr.f32.mxu1 %v496_v41  ;;  %v499_v49 = vmul.f32 %v491_v44, %v435_v47  ;;  %1324 = vmatprep.subr.mxu1 %v799_v55 }
 0x125   : > { %1226 = vmatmul.mubr.f32.gmra.mxu1 %v497_v42  ;;  %v498_v45 = vmul.f32 %v490_v43, %v434_v33  ;;  %v493_v51 = vadd.f32 1.0, %v1448_v30 }
 0x126   : > { %v1450_v48 = vpop.eup %1449  ;;  %1340 = vmatpush3.msra.mxu1 %v799_v55 }
 0x127   : > { %1228 = vmatprep.mubr.f32.mxu1 %v498_v45  ;;  %v492_v50 = vadd.f32 1.0, %v1450_v48  ;;  %v501_v52 = vmul.f32 %v493_v51, %v437_v53  ;;  %1325 = vmatprep.subr.mxu1 %v798_v16 }
 0x128   : > { %1341 = vmatpush3.msra.mxu1 %v798_v16 }
 0x129   : > { %1229 = vmatmul.mubr.f32.gmra.mxu1 %v499_v49  ;;  %v500_v37 = vmul.f32 %v492_v50, %v436_v40  ;;  %1326 = vmatprep.subr.mxu1 %v797_v17  ;;  %v1079_v40 = vld [vmem:[%s1930_s4 + $0x1] ss:$0 sm:$0xff] }
 0x12a   : > { %1342 = vmatpush3.msra.mxu1 %v797_v17 }
 0x12b   : > { %1231 = vmatprep.mubr.f32.mxu1 %v500_v37  ;;  %1327 = vmatprep.subr.mxu1 %v796_v18 }
 0x12c   : > { %1343 = vmatpush3.msra.mxu1 %v796_v18 }
 0x12d   : > { %1232 = vmatmul.mubr.f32.gmra.mxu1 %v501_v52  ;;  %1328 = vmatprep.subr.mxu1 %v795_v19 }
 0x12e   : > { %1344 = vmatpush3.msra.mxu1 %v795_v19 }
 0x12f   : > { %1329 = vmatprep.subr.mxu1 %v794_v20 }
 0x130   : > { %1345 = vmatpush3.msra.mxu1 %v794_v20 }
 0x131   : > { %1330 = vmatprep.subr.mxu1 %v793_v21 }
 0x132   : > { %1346 = vmatpush3.msra.mxu1 %v793_v21 }
 0x133   : > { %1331 = vmatprep.subr.mxu1 %v792_v22 }
 0x134   : > { %1347 = vmatpush3.msra.mxu1 %v792_v22 }
 0x135   : > { %1332 = vmatprep.subr.mxu1 %v791_v23 }
 0x136   : > { %1348 = vmatpush3.msra.mxu1 %v791_v23 }
 0x137   : > { %1333 = vmatprep.subr.mxu1 %v790_v24 }
 0x138   : > { %1349 = vmatpush3.msra.mxu1 %v790_v24 }
 0x139   : > { %1334 = vmatprep.subr.mxu1 %v789_v25 }
 0x13a   : > { %1350 = vmatpush3.msra.mxu1 %v789_v25 }
 0x13b   : > { %1335 = vmatprep.subr.mxu1 %v788_v26 }
 0x13c   : > { %1351 = vmatpush3.msra.mxu1 %v788_v26 }
 0x13d   : > { %1336 = vmatprep.subr.mxu1 %v787_v27 }
 0x13e   : > { %1352 = vmatpush3.msra.mxu1 %v787_v27 }
 0x1e0   : > { %v1224_v56 = vpop.f32.mrf.mxu1 }
 0x1e1   : > { %v1799_v57 = vsub.f32 %v495_v29, %v1224_v56 }
 0x1e2   : > { %v584_v58 = vpop.f32.mrf.mxu1 }
 0x1e3   : > { %v1801_v59 = vsub.f32 %v494_v28, %v584_v58  ;;  %v632_v62 = vmul.f32 %v1799_v57, %v1799_v57  ;;  %v786_v28 = vld [vmem:[%s1929_s3] sm:$0xff] }
 0x1e4   : > { %1337 = vmatprep.subr.mxu1 %v786_v28 }
 0x1e5   : > { %v631_v60 = vmul.f32 %v1801_v59, %v1801_v59  ;;  %v1227_v61 = vpop.f32.mrf.mxu1  ;;  %1353 = vmatpush3.msra.mxu1 %v786_v28 }
 0x1e6   : > { %v1807_v63 = vsub.f32 %v497_v42, %v1227_v61 }
 0x1e7   : > { %v594_v0 = vpop.f32.mrf.mxu1  ;;  %1266 = vmatprep.mubr.f32.mxu0 %v631_v60 }
 0x1e8   : > { %v1809_v1 = vsub.f32 %v496_v41, %v594_v0  ;;  %1267 = vmatmul.mubr.f32.vlgmr.msra.gmra.mxu0 %v632_v62  ;;  %v634_v4 = vmul.f32 %v1807_v63, %v1807_v63 }
 0x1e9   : > { %v1230_v2 = vpop.f32.mrf.mxu1  ;;  %1279 = vmatpush3.msra.mxu0 %v801_v54  ;;  %v1080_v54 = vld [vmem:[%s1930_s4 + $0x2] ss:$0 sm:$0xff] }
 0x1ea   : > { %v633_v3 = vmul.f32 %v1809_v1, %v1809_v1  ;;  %1280 = vmatprep.subr.mxu0 %v800_v46  ;;  %v1815_v5 = vsub.f32 %v499_v49, %v1230_v2 }
 0x1eb   : > { %v604_v6 = vpop.f32.mrf.mxu1  ;;  %1281 = vmatpush3.msra.mxu0 %v800_v46 }
 0x1ec   : > { %v1817_v7 = vsub.f32 %v498_v45, %v604_v6  ;;  %1269 = vmatprep.mubr.f32.mxu0 %v633_v3  ;;  %1282 = vmatprep.subr.mxu0 %v799_v55  ;;  %v636_v10 = vmul.f32 %v1815_v5, %v1815_v5 }
 0x1ed   : > { %v1233_v8 = vpop.f32.mrf.mxu1  ;;  %1270 = vmatmul.mubr.f32.gmra.mxu0 %v634_v4 }
 0x1ee   : > { %v635_v9 = vmul.f32 %v1817_v7, %v1817_v7  ;;  %1283 = vmatpush3.msra.mxu0 %v799_v55  ;;  %v1823_v11 = vsub.f32 %v501_v52, %v1233_v8 }
 0x1ef   : > { %v614_v12 = vpop.f32.mrf.mxu1  ;;  %1284 = vmatprep.subr.mxu0 %v798_v16 }
 0x1f0   : > { %v1825_v13 = vsub.f32 %v500_v37, %v614_v12  ;;  %1272 = vmatprep.mubr.f32.mxu0 %v635_v9  ;;  %v638_v15 = vmul.f32 %v1823_v11, %v1823_v11  ;;  %1285 = vmatpush3.msra.mxu0 %v798_v16 }
 0x1f1   : > { %1273 = vmatmul.mubr.f32.gmra.mxu0 %v636_v10  ;;  %1286 = vmatprep.subr.mxu0 %v797_v17 }
 0x1f2   : > { %v637_v14 = vmul.f32 %v1825_v13, %v1825_v13  ;;  %1287 = vmatpush3.msra.mxu0 %v797_v17 }
 0x1f3   : > { %1288 = vmatprep.subr.mxu0 %v796_v18 }
 0x1f4   : > { %1275 = vmatprep.mubr.f32.mxu0 %v637_v14  ;;  %1289 = vmatpush3.msra.mxu0 %v796_v18 }
 0x1f5   : > { %1276 = vmatmul.mubr.f32.gmra.mxu0 %v638_v15  ;;  %1290 = vmatprep.subr.mxu0 %v795_v19 }
 0x1f6   : > { %1291 = vmatpush3.msra.mxu0 %v795_v19 }
 0x1f7   : > { %1292 = vmatprep.subr.mxu0 %v794_v20 }
 0x1f8   : > { %1293 = vmatpush3.msra.mxu0 %v794_v20 }
 0x1f9   : > { %1294 = vmatprep.subr.mxu0 %v793_v21 }
 0x1fa   : > { %1295 = vmatpush3.msra.mxu0 %v793_v21 }
 0x1fb   : > { %1296 = vmatprep.subr.mxu0 %v792_v22 }
 0x1fc   : > { %1297 = vmatpush3.msra.mxu0 %v792_v22 }
 0x1fd   : > { %1298 = vmatprep.subr.mxu0 %v791_v23 }
 0x1fe   : > { %1299 = vmatpush3.msra.mxu0 %v791_v23 }
 0x1ff   : > { %1300 = vmatprep.subr.mxu0 %v790_v24 }
 0x200   : > { %1301 = vmatpush3.msra.mxu0 %v790_v24 }
 0x201   : > { %1302 = vmatprep.subr.mxu0 %v789_v25 }
 0x202   : > { %1303 = vmatpush3.msra.mxu0 %v789_v25 }
 0x203   : > { %1304 = vmatprep.subr.mxu0 %v788_v26 }
 0x204   : > { %1305 = vmatpush3.msra.mxu0 %v788_v26 }
 0x205   : > { %1306 = vmatprep.subr.mxu0 %v787_v27 }
 0x206   : > { %1307 = vmatpush3.msra.mxu0 %v787_v27 }
 0x207   : > { %1308 = vmatprep.subr.mxu0 %v786_v28 }
 0x208   : > { %1309 = vmatpush3.msra.mxu0 %v786_v28 }
 0x2a8   : > { %v1268_v29 = vpop.f32.mrf.mxu0 }
 0x2a9   : > { %v711_v31 = vadd.f32 1e-05, %v1268_v29 }
 0x2aa   : > { %v705_v32 = vpop.f32.mrf.mxu0 }
 0x2ab   : > { %1451 = vrsqrt.f32 %v711_v31  ;;  %v706_v34 = vadd.f32 1e-05, %v705_v32 }
 0x2ad   : > { %1453 = vrsqrt.f32 %v706_v34  ;;  %v1271_v35 = vpop.f32.mrf.mxu0 }
 0x2ae   : > { %v721_v36 = vadd.f32 1e-05, %v1271_v35 }
 0x2af   : > { %v715_v38 = vpop.f32.mrf.mxu0 }
 0x2b0   : > { %1455 = vrsqrt.f32 %v721_v36  ;;  %v716_v39 = vadd.f32 1e-05, %v715_v38 }
 0x2b1   : > { %v1274_v41 = vpop.f32.mrf.mxu0 }
 0x2b2   : > { %1457 = vrsqrt.f32 %v716_v39  ;;  %v731_v42 = vadd.f32 1e-05, %v1274_v41 }
 0x2b3   : > { %v725_v33 = vpop.f32.mrf.mxu0 }
 0x2b4   : > { %1459 = vrsqrt.f32 %v731_v42  ;;  %v726_v43 = vadd.f32 1e-05, %v725_v33 }
 0x2b5   : > { %v1277_v44 = vpop.f32.mrf.mxu0 }
 0x2b6   : > { %1461 = vrsqrt.f32 %v726_v43  ;;  %v741_v30 = vadd.f32 1e-05, %v1277_v44 }
 0x2b7   : > { %v735_v45 = vpop.f32.mrf.mxu0 }
 0x2b8   : > { %v1452_v47 = vpop.eup %1451  ;;  %1463 = vrsqrt.f32 %v741_v30  ;;  %v736_v48 = vadd.f32 1e-05, %v735_v45 }
 0x2b9   : > { %v753_v49 = vmul.f32 %v1452_v47, %v1799_v57 }
 0x2ba   : > { %v1454_v50 = vpop.eup %1453  ;;  %1465 = vrsqrt.f32 %v736_v48 }
 0x2bb   : > { %v752_v51 = vmul.f32 %v1454_v50, %v1801_v59  ;;  %v766_v37 = vmul.f32 %v1079_v40, %v753_v49 }
 0x2bd   : > { %v1456_v53 = vpop.eup %1455  ;;  %v765_v52 = vmul.f32 %v1079_v40, %v752_v51  ;;  %v779_v57 = vadd.f32 %v1080_v54, %v766_v37 }
 0x2be   : > { %v755_v46 = vmul.f32 %v1456_v53, %v1807_v63 }
 0x2bf   : > { %v1458_v55 = vpop.eup %1457  ;;  %v778_v56 = vadd.f32 %v1080_v54, %v765_v52 }
 0x2c0   : > { %v754_v58 = vmul.f32 %v1458_v55, %v1809_v1  ;;  %v768_v61 = vmul.f32 %v1079_v40, %v755_v46 }
 0x2c1   : > { %v1460_v60 = vpop.eup %1459  ;;  %1310 = vmatprep.mubr.f32.mxu0 %v778_v56 }
 0x2c2   : > { %1311 = vmatmul.mubr.f32.vlgmr.msra.gmra.mxu0 %v779_v57  ;;  %v767_v62 = vmul.f32 %v1079_v40, %v754_v58  ;;  %v757_v59 = vmul.f32 %v1460_v60, %v1815_v5  ;;  %v781_v6 = vadd.f32 %v1080_v54, %v768_v61 }
 0x2c3   : > { %v1462_v0 = vpop.eup %1461 }
 0x2c4   : > { %v780_v2 = vadd.f32 %v1080_v54, %v767_v62  ;;  %v756_v3 = vmul.f32 %v1462_v0, %v1817_v7  ;;  %v770_v8 = vmul.f32 %v1079_v40, %v757_v59  ;;  %v939_v7 = vld [vmem:[%s1930_s4 + $0x3] sm:$0x1] }
 0x2c5   : > { %v1464_v4 = vpop.eup %1463  ;;  %1354 = vpush %v939_v7 }
 0x2c6   : > { %1313 = vmatprep.mubr.f32.mxu1 %v780_v2  ;;  %v769_v63 = vmul.f32 %v1079_v40, %v756_v3  ;;  %v759_v9 = vmul.f32 %v1464_v4, %v1823_v11  ;;  %v783_v14 = vadd.f32 %v1080_v54, %v770_v8 }
 0x2c7   : > { %v1466_v10 = vpop.eup %1465  ;;  %1314 = vmatmul.mubr.f32.vlgmr.msra.gmra.mxu1 %v781_v6 }
 0x2c8   : > { %v782_v1 = vadd.f32 %v1080_v54, %v769_v63  ;;  %v758_v12 = vmul.f32 %v1466_v10, %v1825_v13  ;;  %v772_v15 = vmul.f32 %v1079_v40, %v759_v9 }
 0x2ca   : > { %1316 = vmatprep.mubr.f32.mxu1 %v782_v1  ;;  %v771_v5 = vmul.f32 %v1079_v40, %v758_v12  ;;  %v785_v17 = vadd.f32 %v1080_v54, %v772_v15 }
 0x2cb   : > { %1317 = vmatmul.mubr.f32.gmra.mxu1 %v783_v14 }
 0x2cc   : > { %v784_v16 = vadd.f32 %v1080_v54, %v771_v5 }
 0x2ce   : > { %1319 = vmatprep.mubr.f32.mxu1 %v784_v16 }
 0x2cf   : > { %1320 = vmatmul.mubr.f32.gmra.mxu1 %v785_v17 }
 0x2f6   : > { %s1355_s11 = spop %1354 }
 0x2f7   : > { %v942_v24 = vstv %s1355_s11 }
 0x382   : > { %v1312_v11 = vpop.f32.mrf.mxu0 }
 0x384   : > { %v868_v18 = vpop.f32.mrf.mxu0 }
 0x385   : > { %907 = vxpose.xlu0.b32.start [1/8] (short) (narrow) %v868_v18, 8 }
 0x387   : > { %v1315_v19 = vpop.f32.mrf.mxu1 }
 0x389   : > { %908 = vxpose.xlu0.b32.cont [2/8] (short) (narrow) %v1312_v11, 8  ;;  %v878_v13 = vpop.f32.mrf.mxu1 }
 0x38b   : > { %v1318_v20 = vpop.f32.mrf.mxu1 }
 0x38d   : > { %909 = vxpose.xlu0.b32.cont [3/8] (short) (narrow) %v878_v13, 8  ;;  %v888_v21 = vpop.f32.mrf.mxu1 }
 0x38f   : > { %v1321_v22 = vpop.f32.mrf.mxu1 }
 0x391   : > { %910 = vxpose.xlu0.b32.cont [4/8] (short) (narrow) %v1315_v19, 8  ;;  %v898_v23 = vpop.f32.mrf.mxu1 }
 0x395   : > { %911 = vxpose.xlu0.b32.cont [5/8] (short) (narrow) %v888_v21, 8 }
 0x399   : > { %912 = vxpose.xlu0.b32.cont [6/8] (short) (narrow) %v1318_v20, 8 }
 0x39d   : > { %913 = vxpose.xlu0.b32.cont [7/8] (short) (narrow) %v898_v23, 8 }
 0x3a1   : > { %914 = vxpose.xlu0.b32.end [8/8] (short) (narrow) %v1321_v22, 8 }
 0x401   : > { %v923_v25 = vpop.trf.xlu0 }
 0x402   : > { %v944_v26 = vadd.f32 %v942_v24, %v923_v25 }
 0x404   : > { %946 = vst.msk [vmem:[%s272_s12] sm:$0xf] %vm945_vm1, %v944_v26 }
 0x405   : > { %1532 = shalt.err (!%p1529_p9)
}
 0x406   : > { %s1533_s27 = scalar_lea.hbm %s960_s15, 64  ;;  %s1537_s10 = scalar_lea.hbm %s1931_s5, 128 }
 0x407   : > { %p1534_p12 = scmp.ne.s32.totalorder %s960_s15, %s1533_s27  ;;  %p1538_p5 = scmp.lt.s32.totalorder %s960_s15, %s1931_s5 }
 0x408   : > { %p1539_p3 = scmp.lt.s32.totalorder %s1537_s10, %s1533_s27 }
 0x409   : > { %p1535_p1 = pnand %p1534_p12, %p1938_p10 }
 0x40a   : > { %p1540_p4 = por %p1539_p3, %p1538_p5 }
 0x40b   : > { %p1536_p2 = pneg %p1535_p1 }
 0x40d   : > { %p1541_p8 = pnand %p1540_p4, %p1536_p2 }
 0x40f   : > { %1544 = shalt.err (!%p1541_p8)
}
 0x410   : > { %1364 = dma.vmem_to_hbm [thread:$0]  (%p1938_p10), %s963_s8, 64, %s960_s15, %s948_s16  }
 0x411 PF: > { %p1381_p11 = scmp.ge.s32.totalorder %s1603_s23, 2  ;;  %s974_s12 = sand.u32 1, %s1583_s18  }
 0x412   : > { %p1939_p13 = scmp.ne.s32.totalorder %s1934_s30, 0  ;;  %s975_s13 = scalar_lea.sflag [#allocation4], %s974_s12 }
 0x414   : > { %p1374_p0 = pnand %p1381_p11, %p1939_p13 }
 0x416   : > { %p1375_p6 = pneg %p1374_p0 }
 0x418   : > { %1578 = dma.done.wait (%p1375_p6), %s975_s13, 64  }
 0x419   : > { %1580 = vsyncadd (%p1375_p6), %s975_s13, 4294967232  ;;  %s20_s23 = sadd.s32 1, %s1603_s23   ;;  %s1940_s18 = smov %s1587_s19 }
 0x41a   : > { %p17_p7 = scmp.ge.s32.totalorder %s20_s23, 4   ;;  %s1941_s19 = smov %s1591_s20 }
 0x41b   : > { %s1942_s20 = smov %s1693_s6  ;;  %s1943_s21 = smov %s1599_s22 }
 0x41c   : > { %s1944_s22 = smov %s1946_s26  ;;  %19 = sbr.rel (!%p17_p7) target bundleno = 6 (0x6), region = 84 }
 0x421   :  { %980 = vsyncpa [#allocation3], 1 }
 0x422   :  { %982 = vsyncpa [#allocation3 + $0x1], 1 }
 0x423   :  { %983 = vsyncpa [#allocation6], 1 }
 0x424   :  { %984 = vsyncpa [#allocation4], 1 }
 0x425   :  { %986 = vsyncpa [#allocation4 + $0x1], 1 }

</bundles_post_ra>
